<compile_context>
chip_gen: v7x
topology: tpu7x:2x2x1
jax: 0.10.0
libtpu: 0.0.40
codegen_flags: <defaults>
</compile_context>

<pallas_src>
import math

import jax
import jax.numpy as jnp
from jax.experimental import pallas as pl
from jax.experimental.pallas import tpu as pltpu

_MIB = 1024 * 1024


def _round_up(x, m):
    return ((x + m - 1) // m) * m


def _tpu_vmem_and_kind():
    try:
        vmem = pltpu.get_tpu_info().vmem_capacity_bytes
    except Exception:
        vmem = 64 * _MIB  # conservative (v7x-sized) fallback
    try:
        kind = jax.devices()[0].device_kind.lower()
    except Exception:
        kind = ""
    return vmem, kind


def _chip_budget():
    """Returns (tm_target, th_cap, vmem_limit_bytes) for the current chip."""
    vmem_cap, kind = _tpu_vmem_and_kind()
    if vmem_cap <= 64 * _MIB:
        # v7x: 64 MiB/TC VMEM, 3.2 TB/s HBM -> compute-bound at ~tm>=320.
        return 512, 256, min(int(0.85 * vmem_cap), 56 * _MIB)
    if "v5" in kind:
        # v5e: roofline crossover ~240 FLOPs/byte -> tm=256 already suffices.
        return 256, 512, min(int(0.80 * vmem_cap), 100 * _MIB)
    # v6e (default for 128 MiB-VMEM chips): needs ~640 FLOPs/byte.
    return 768, 512, min(int(0.80 * vmem_cap), 104 * _MIB)


def select_hidden_tile(D, H, dtype):
    """Choose hidden chunk th for pre-packing w13 (call once at weight load)."""
    bytes_per = jnp.dtype(dtype).itemsize
    _, th_cap, vmem_limit = _chip_budget()
    # Fast path: resident weights if 2x (double-buffer) their footprint fits
    # in roughly half the VMEM budget.
    if 2 * 3 * D * H * bytes_per <= vmem_limit // 2:
        return H
    for cand in (512, 256, 128):
        if cand <= th_cap and H % cand == 0:
            return cand
    # TODO(synk): pad H when not divisible by 128 instead of falling back.
    return H


def pack_w13(w1, w3, th):
    """Pre-pack the fused up-projection weight ONCE at weight-load time.

    w1, w3: (D, H) -> (n_h, D, 2*th) with
      w13[k, :, :th] = w1[:, k*th:(k+1)*th],  w13[k, :, th:] = w3[:, ...]
    """
    D, H = w1.shape
    assert H % th == 0, "hidden dim must be divisible by the hidden tile"
    n_h = H // th
    return jnp.concatenate(
        [w1.reshape(D, n_h, th).transpose(1, 0, 2),
         w3.reshape(D, n_h, th).transpose(1, 0, 2)],
        axis=-1,
    )


def _ffn_kernel_resident(x_ref, w13_ref, w2_ref, o_ref):
    # 1-D grid over token tiles; weights stay VMEM-resident (single HBM pass).
    H = w2_ref.shape[0]
    x = x_ref[...]
    w13 = w13_ref[0]                                               # (D, 2H)
    h = jnp.dot(x, w13, preferred_element_type=jnp.float32)        # (tm, 2H)
    h1 = h[:, :H]
    h3 = h[:, H:]
    gated = (h1 * jax.nn.sigmoid(h1)) * h3                         # silu(h1)*h3, f32
    # Eval-mode dropout = identity.
    o_ref[...] = jnp.dot(gated.astype(w2_ref.dtype), w2_ref[...],
                         preferred_element_type=jnp.float32).astype(o_ref.dtype)


def _ffn_kernel_reduce(x_ref, w13_ref, w2_ref, o_ref, acc_ref):
    # 2-D grid (token tiles x hidden chunks); hidden axis is the reduction.
    # Requires n_h >= 2 (k==0 and k==last are distinct grid steps).
    k = pl.program_id(1)
    n_k = pl.num_programs(1)
    th = w2_ref.shape[0]

    x = x_ref[...]
    w13 = w13_ref[0]                                               # (D, 2*th)
    h = jnp.dot(x, w13, preferred_element_type=jnp.float32)        # (tm, 2*th)
    h1 = h[:, :th]
    h3 = h[:, th:]
    gated = (h1 * jax.nn.sigmoid(h1)) * h3
    partial = jnp.dot(gated.astype(w2_ref.dtype), w2_ref[...],
                      preferred_element_type=jnp.float32)          # (tm, D) f32

    @pl.when(k == 0)
    def _():
        acc_ref[...] = partial           # first chunk initializes (no zero pass)

    @pl.when(jnp.logical_and(k > 0, k < n_k - 1))
    def _():
        acc_ref[...] += partial

    @pl.when(k == n_k - 1)
    def _():
        # Fuse the last partial into the output store: saves a full (tm, D)
        # f32 accumulator store + reload per token tile.
        # Eval-mode dropout = identity.
        o_ref[...] = (acc_ref[...] + partial).astype(o_ref.dtype)


def feed_forward(x_tokens, w13, w2, *, tm=None):
    """x_tokens: (M, D). w13: (n_h, D, 2*th) pre-packed. w2: (H, D). -> (M, D)."""
    M, D = x_tokens.shape
    H, D2 = w2.shape
    assert D2 == D
    dtype = x_tokens.dtype
    bytes_per = jnp.dtype(dtype).itemsize

    n_h, D3, two_th = w13.shape
    assert D3 == D
    th = two_th // 2
    assert n_h * th == H
    single_pass = (n_h == 1)

    tm_target, _, vmem_limit = _chip_budget()
    if tm is not None:
        tm_target = tm

    # Token tile: bf16 packs 16 sublanes per vreg -> align rows to 16 for
    # sub-32-bit dtypes (8 otherwise); never grow past the token count.
    row_align = 16 if bytes_per <= 2 else 8
    tm = min(tm_target, _round_up(M, row_align))
    tm = _round_up(tm, row_align)

    # Shrink tm if the per-step VMEM budget does not fit (robustness at large D/H).
    def fits(tm_):
        acc = 0 if single_pass else tm_ * D * 4                 # f32 accumulator
        xio = 4 * tm_ * D * bytes_per                           # x + out, double-buffered
        wgt = (2 * 3 * D * H if single_pass else 6 * D * th) * bytes_per
        return acc + xio + wgt <= int(0.9 * vmem_limit)

    while tm > row_align and not fits(tm):
        tm = _round_up(tm // 2, row_align)

    # Pad tokens so the grid covers M exactly (handles ragged token counts).
    M_pad = _round_up(M, tm)
    if M_pad != M:
        x_tokens = jnp.pad(x_tokens, ((0, M_pad - M), (0, 0)))
    n_tok = M_pad // tm

    # HBM traffic: activations in+out once; weights re-streamed once per token
    # tile on the reduction path, streamed once on the resident fast path.
    weight_passes = 1 if single_pass else n_tok
    cost = pl.CostEstimate(
        flops=6 * M_pad * D * H,           # 4*M*D*H up-proj + 2*M*H*D down-proj
        transcendentals=M_pad * H,         # one sigmoid per hidden activation
        bytes_accessed=(2 * M_pad * D + weight_passes * 3 * D * H) * bytes_per,
    )

    if single_pass:
        grid = (n_tok,)
        in_specs = [
            pl.BlockSpec((tm, D), lambda i: (i, 0)),                 # x tile
            pl.BlockSpec((1, D, 2 * H), lambda i: (0, 0, 0)),        # resident w1|w3
            pl.BlockSpec((H, D), lambda i: (0, 0)),                  # resident w2
        ]
        out_specs = pl.BlockSpec((tm, D), lambda i: (i, 0))
        scratch_shapes = []
        kernel = _ffn_kernel_resident
        dims = ("parallel",)
    else:
        grid = (n_tok, n_h)
        in_specs = [
            pl.BlockSpec((tm, D), lambda i, k: (i, 0)),              # x tile
            pl.BlockSpec((1, D, 2 * th), lambda i, k: (k, 0, 0)),    # w1|w3 chunk
            pl.BlockSpec((th, D), lambda i, k: (k, 0)),              # w2 chunk
        ]
        out_specs = pl.BlockSpec((tm, D), lambda i, k: (i, 0))
        scratch_shapes = [pltpu.VMEM((tm, D), jnp.float32)]
        kernel = _ffn_kernel_reduce
        dims = ("parallel", "arbitrary")   # tokens sharded, hidden reduced (last)

    out = pl.pallas_call(
        kernel,
        out_shape=jax.ShapeDtypeStruct((M_pad, D), dtype),
        grid_spec=pltpu.PrefetchScalarGridSpec(
            num_scalar_prefetch=0,
            grid=grid,
            in_specs=in_specs,
            out_specs=out_specs,
            scratch_shapes=scratch_shapes,
        ),
        compiler_params=pltpu.CompilerParams(
            dimension_semantics=dims,
            vmem_limit_bytes=vmem_limit,
        ),
        cost_estimate=cost,
    )(x_tokens, w13, w2)

    return out[:M] if M_pad != M else out


def _llama_hidden_dim(dim, multiple_of, ffn_dim_multiplier=None):
    hidden_dim = int(2 * dim / 3)
    if ffn_dim_multiplier is not None:
        hidden_dim = int(ffn_dim_multiplier * hidden_dim)
    hidden_dim = multiple_of * ((hidden_dim + multiple_of - 1) // multiple_of)
    return hidden_dim


if __name__ == "__main__":
    # Small ModelArgs-consistent shapes
    dim = 256
    multiple_of = 128
    hidden_dim = _llama_hidden_dim(dim, multiple_of)  # ceil(170/128)*128 = 256
    batch, seq = 2, 9                                 # M = 18 -> exercises padding path

    key = jax.random.PRNGKey(0)
    kx, k1, k2, k3 = jax.random.split(key, 4)

    # nn.Linear(in, out, bias=False) weight has shape (out, in); y = x @ W.T.
    # Store pre-transposed (in, out) for the kernel.
    def init_linear(k, fan_in, fan_out):
        bound = 1.0 / math.sqrt(fan_in)
        w = jax.random.uniform(k, (fan_out, fan_in), jnp.float32, -bound, bound)
        return w.T  # (fan_in, fan_out)

    x = jax.random.normal(kx, (batch, seq, dim), dtype=jnp.float32)
    w1 = init_linear(k1, dim, hidden_dim)   # (D, H)
    w3 = init_linear(k3, dim, hidden_dim)   # (D, H)
    w2 = init_linear(k2, hidden_dim, dim)   # (H, D)

    # bf16 operands (native MXU input on all generations); f32 accumulation in-kernel.
    x_bf16 = x.astype(jnp.bfloat16)
    w1_b = w1.astype(jnp.bfloat16)
    w3_b = w3.astype(jnp.bfloat16)
    w2_b = w2.astype(jnp.bfloat16)
    x_tokens = x_bf16.reshape(batch * seq, dim)

    # Reference in plain JAX f32 from the same bf16 operands
    # (eval-mode dropout = identity).
    xf = x_tokens.astype(jnp.float32)
    h = jax.nn.silu(xf @ w1_b.astype(jnp.float32)) * (xf @ w3_b.astype(jnp.float32))
    ref = (h @ w2_b.astype(jnp.float32)).reshape(batch, seq, dim)

    # 1) Auto plan: at these sizes the weights fit resident -> single-pass path.
    th_auto = select_hidden_tile(dim, hidden_dim, jnp.bfloat16)
    w13_auto = pack_w13(w1_b, w3_b, th_auto)          # packed ONCE at load time
    out = feed_forward(x_tokens, w13_auto, w2_b).reshape(batch, seq, dim)
    jax.block_until_ready(out)
    assert jnp.allclose(out.astype(jnp.float32), ref, atol=2e-2, rtol=2e-2), \
        "mismatch vs reference (single-pass path)"

    # 2) Forced th=128 -> 2 hidden chunks, exercising the reduction/accumulator
    #    path used at real LLaMA sizes.
    w13_chunked = pack_w13(w1_b, w3_b, 128)
    out2 = feed_forward(x_tokens, w13_chunked, w2_b).reshape(batch, seq, dim)
    jax.block_until_ready(out2)
    assert jnp.allclose(out2.astype(jnp.float32), ref, atol=2e-2, rtol=2e-2), \
        "mismatch vs reference (reduction path)"

    print("KERNEL_OK")
</pallas_src>

<mosaic_0001>
module attributes {stable_mosaic.version = 11 : i64} {
  func.func @_ffn_kernel_resident(%arg0: i32, %arg1: memref<32x256xbf16, #tpu.memory_space<vmem>>, %arg2: memref<1x256x512xbf16, #tpu.memory_space<vmem>>, %arg3: memref<256x256xbf16, #tpu.memory_space<vmem>>, %arg4: memref<32x256xbf16, #tpu.memory_space<vmem>>) attributes {dimension_semantics = [#tpu.dimension_semantics<parallel>], iteration_bounds = array<i64: 1>, scalar_prefetch = 0 : i64, scratch_operands = 0 : i64, tpu.core_type = #tpu.core_type<tc>, window_params = [{transform_indices = @transform_0, window_bounds = array<i64: 32, 256>}, {pipeline_mode = #tpu.pipeline_mode<synchronous>, transform_indices = @transform_1, window_bounds = array<i64: 1, 256, 512>}, {pipeline_mode = #tpu.pipeline_mode<synchronous>, transform_indices = @transform_2, window_bounds = array<i64: 256, 256>}, {transform_indices = @transform_3, window_bounds = array<i64: 32, 256>}]} {
    %c0 = arith.constant 0 : index
    %c0_0 = arith.constant 0 : index
    %0 = vector.load %arg1[%c0, %c0_0] : memref<32x256xbf16, #tpu.memory_space<vmem>>, vector<32x256xbf16>
    %c0_1 = arith.constant 0 : index
    %c0_2 = arith.constant 0 : index
    %c0_3 = arith.constant 0 : index
    %1 = vector.load %arg2[%c0_1, %c0_2, %c0_3] : memref<1x256x512xbf16, #tpu.memory_space<vmem>>, vector<1x256x512xbf16>
    %2 = vector.shape_cast %1 : vector<1x256x512xbf16> to vector<256x512xbf16>
    %cst = arith.constant dense<0.000000e+00> : vector<32x512xf32>
    %3 = tpu.matmul %0, %2, %cst {dimension_numbers = #tpu.dot_dimension_numbers<[1], [0], [0], [1], [0, 0, 1, 1], [], []>} : vector<32x256xbf16>, vector<256x512xbf16>, vector<32x512xf32> -> vector<32x512xf32>
    %4 = vector.extract_strided_slice %3 {offsets = [0, 0], sizes = [32, 256], strides = [1, 1]} : vector<32x512xf32> to vector<32x256xf32>
    %5 = vector.extract_strided_slice %3 {offsets = [0, 256], sizes = [32, 256], strides = [1, 1]} : vector<32x512xf32> to vector<32x256xf32>
    %6 = arith.negf %4 : vector<32x256xf32>
    %7 = math.exp %6 : vector<32x256xf32>
    %cst_4 = arith.constant 1.000000e+00 : f32
    %8 = vector.broadcast %cst_4 : f32 to vector<32x256xf32>
    %9 = arith.addf %8, %7 : vector<32x256xf32>
    %10 = arith.divf %8, %9 : vector<32x256xf32>
    %11 = arith.mulf %4, %10 : vector<32x256xf32>
    %12 = arith.mulf %11, %5 : vector<32x256xf32>
    %13 = arith.truncf %12 : vector<32x256xf32> to vector<32x256xbf16>
    %c0_5 = arith.constant 0 : index
    %c0_6 = arith.constant 0 : index
    %14 = vector.load %arg3[%c0_5, %c0_6] : memref<256x256xbf16, #tpu.memory_space<vmem>>, vector<256x256xbf16>
    %cst_7 = arith.constant dense<0.000000e+00> : vector<32x256xf32>
    %15 = tpu.matmul %13, %14, %cst_7 {dimension_numbers = #tpu.dot_dimension_numbers<[1], [0], [0], [1], [0, 0, 1, 1], [], []>} : vector<32x256xbf16>, vector<256x256xbf16>, vector<32x256xf32> -> vector<32x256xf32>
    %16 = arith.truncf %15 : vector<32x256xf32> to vector<32x256xbf16>
    %c0_8 = arith.constant 0 : index
    %c0_9 = arith.constant 0 : index
    %17 = vector.load %arg4[%c0_8, %c0_9] : memref<32x256xbf16, #tpu.memory_space<vmem>>, vector<32x256xbf16>
    tpu.vector_store %arg4[%c0_8, %c0_9], %16 {strides = array<i32>} : memref<32x256xbf16, #tpu.memory_space<vmem>>, vector<32x256xbf16>,
    return
  }
  func.func @transform_0(%arg0: i32) -> (i32, i32) {
    %c0_i32 = arith.constant 0 : i32
    %c0_i32_0 = arith.constant 0 : i32
    return %arg0, %c0_i32 : i32, i32
  }
  func.func @transform_1(%arg0: i32) -> (i32, i32, i32) {
    %c0_i32 = arith.constant 0 : i32
    %c0_i32_0 = arith.constant 0 : i32
    %c0_i32_1 = arith.constant 0 : i32
    %c0_i32_2 = arith.constant 0 : i32
    return %c0_i32, %c0_i32_0, %c0_i32_1 : i32, i32, i32
  }
  func.func @transform_2(%arg0: i32) -> (i32, i32) {
    %c0_i32 = arith.constant 0 : i32
    %c0_i32_0 = arith.constant 0 : i32
    %c0_i32_1 = arith.constant 0 : i32
    return %c0_i32, %c0_i32_0 : i32, i32
  }
  func.func @transform_3(%arg0: i32) -> (i32, i32) {
    %c0_i32 = arith.constant 0 : i32
    %c0_i32_0 = arith.constant 0 : i32
    return %arg0, %c0_i32 : i32, i32
  }
}

</mosaic_0001>

<bundles_post_ra>
// kernel: tpu_custom_call.1
= control target key start
LH: loop header
LB: loop body
LE: loop exit
PB: predicated region body
PF: predicated region fallthrough
CT: control target
= control target key end

     0   :  { %8 = vsyncpa [#allocation3], 0  ;;  %s1446_s0 = inlined_call_operand.hbm [shape: bf16[32,256], index: 0, kind: input, shape index: {}]   ;;  %s1447_s1 = inlined_call_operand.hbm [shape: bf16[1,256,512], index: 1, kind: input, shape index: {}]   ;;  %s1448_s2 = inlined_call_operand.hbm [shape: bf16[256,256], index: 2, kind: input, shape index: {}]   ;;  %s1449_s3 = inlined_call_operand.hbm [shape: bf16[32,256], index: 3, kind: output, shape index: {}]  }
   0x1   :  { %9 = vsyncpa [#allocation6], 0 }
   0x2   :  { %10 = vsyncpa [#allocation4], 0  ;;  %s1361_s12 = smov [#allocation5]   ;;  %s1267_s16 = scalar_lea.hbm %s1447_s1, 8192 }
   0x3   :  { %s28_s13 = sshll.u32 %s1361_s12, 4  ;;  %p1268_p0 = scmp.ne.s32.totalorder %s1447_s1, %s1267_s16  ;;  %s29_s13 = int_to_ptr.vmem [resolvable:$true] %s28_s13 }
   0x4   :  { %p1271_p1 = scmp.lt.u32.totalorder %s1267_s16, %s1447_s1 }
   0x6   :  { %p1273_p2 = pnand %p1271_p1, %p1268_p0 }
   0x8   :  { %1276 = shalt.err (!%p1273_p2)
}
   0x9   :  { %s1277_s21 = scalar_lea.vmem %s29_s13, 8192  ;;  %p1282_p4 = scmp.lt.s32.totalorder %s29_s13, %s29_s13 }
   0xa   :  { %p1278_p3 = scmp.ne.s32.totalorder %s29_s13, %s1277_s21  ;;  %p1283_p5 = scmp.lt.s32.totalorder %s1277_s21, %s1277_s21 }
   0xc   :  { %p1284_p6 = por %p1283_p5, %p1282_p4 }
   0xe   :  { %p1285_p7 = pnand %p1284_p6, %p1278_p3 }
  0x10   :  { %1288 = shalt.err (!%p1285_p7)
}
  0x11   :  { %s1362_s22 = smov 256   ;;  %s1363_s23 = smov 16  }
  0x12   :  { %34 = dma.hbm_to_vmem [thread:$0]  %s1447_s1, 8192, %s29_s13, [#allocation6], %s1362_s22, %s1362_s22, %s1363_s23  }
  0x13   :  { %s1364_s26 = smov [#allocation2]   ;;  %s1289_s30 = scalar_lea.hbm %s1446_s0, 512 }
  0x14   :  { %s16_s27 = sshll.u32 %s1364_s26, 4  ;;  %p1290_p8 = scmp.ne.s32.totalorder %s1446_s0, %s1289_s30  ;;  %s17_s27 = int_to_ptr.vmem [resolvable:$true] %s16_s27 }
  0x15   :  { %p1293_p9 = scmp.lt.u32.totalorder %s1289_s30, %s1446_s0 }
  0x17   :  { %p1295_p10 = pnand %p1293_p9, %p1290_p8 }
  0x19   :  { %1298 = shalt.err (!%p1295_p10)
}
  0x1a   :  { %s1299_s8 = scalar_lea.vmem %s17_s27, 512  ;;  %p1304_p12 = scmp.lt.s32.totalorder %s17_s27, %s17_s27 }
  0x1b   :  { %p1300_p11 = scmp.ne.s32.totalorder %s17_s27, %s1299_s8  ;;  %p1305_p13 = scmp.lt.s32.totalorder %s1299_s8, %s1299_s8 }
  0x1d   :  { %p1306_p0 = por %p1305_p13, %p1304_p12 }
  0x1f   :  { %p1307_p1 = pnand %p1306_p0, %p1300_p11 }
  0x21   :  { %1310 = shalt.err (!%p1307_p1)
}
  0x22   :  { %s1365_s1 = smov 128   ;;  %s1366_s9 = smov 8  }
  0x23   :  { %22 = dma.hbm_to_vmem [thread:$0]  %s1446_s0, 512, %s17_s27, [#allocation3], %s1365_s1, %s1365_s1, %s1366_s9  }
  0x24   :  { %s1367_s12 = smov [#allocation7]   ;;  %s1311_s16 = scalar_lea.hbm %s1448_s2, 4096 }
  0x25   :  { %s40_s13 = sshll.u32 %s1367_s12, 4  ;;  %p1312_p2 = scmp.ne.s32.totalorder %s1448_s2, %s1311_s16  ;;  %s41_s13 = int_to_ptr.vmem [resolvable:$true] %s40_s13 }
  0x26   :  { %p1315_p3 = scmp.lt.u32.totalorder %s1311_s16, %s1448_s2 }
  0x28   :  { %p1317_p4 = pnand %p1315_p3, %p1312_p2 }
  0x2a   :  { %1320 = shalt.err (!%p1317_p4)
}
  0x2b   :  { %s1321_s21 = scalar_lea.vmem %s41_s13, 4096  ;;  %p1326_p6 = scmp.lt.s32.totalorder %s41_s13, %s41_s13 }
  0x2c   :  { %p1322_p5 = scmp.ne.s32.totalorder %s41_s13, %s1321_s21  ;;  %p1327_p7 = scmp.lt.s32.totalorder %s1321_s21, %s1321_s21 }
  0x2e   :  { %p1328_p8 = por %p1327_p7, %p1326_p6 }
  0x30   :  { %p1329_p9 = pnand %p1328_p8, %p1322_p5 }
  0x32   :  { %1332 = shalt.err (!%p1329_p9)
}
  0x33   :  { %46 = dma.hbm_to_vmem [thread:$0]  %s1448_s2, 4096, %s41_s13, [#allocation6], %s1365_s1, %s1365_s1, %s1366_s9  }
  0x34   :  { %1355 = dma.done.wait [#allocation3], 512  }
  0x35   :  { %1356 = vsyncadd [#allocation3], 4294966784 }
  0x36   :  { %1357 = dma.done.wait [#allocation6], 12288  }
  0x37   :  { %1358 = vsyncadd [#allocation6], 4294955008  ;;  %v1085_v0 = vld [vmem:[#allocation5 + $0x4] ss:$16 sps:$4 sm:$0xff]   ;;  %v1087_v1 = vld [vmem:[#allocation5] ss:$16 sps:$4 sm:$0xff]  }
  0x38   :  { %464 = vmatprep.subr.bf16.mxu0 %v1085_v0  ;;  %v1088_v2 = vld [vmem:[#allocation5 + $0x24] ss:$16 sps:$4 sm:$0xff]   ;;  %v1090_v3 = vld [vmem:[#allocation5 + $0x20] ss:$16 sps:$4 sm:$0xff]   ;;  %v1106_v7 = vld [vmem:[#allocation5 + $0xc] ss:$16 sps:$4 sm:$0xff]  }
  0x39   :  { %465 = vmatpush1.bf16.msra.mxu0 %v1087_v1  ;;  %v1091_v4 = vld [vmem:[#allocation5 + $0x44] ss:$16 sps:$4 sm:$0xff]   ;;  %v1093_v5 = vld [vmem:[#allocation5 + $0x40] ss:$16 sps:$4 sm:$0xff]   ;;  %v1108_v8 = vld [vmem:[#allocation5 + $0x8] ss:$16 sps:$4 sm:$0xff]   ;;  %517 = vmatprep.subr.bf16.mxu1 %v1106_v7 }
  0x3a   :  { %466 = vmatprep.subr.bf16.mxu0 %v1088_v2  ;;  %v1094_v6 = vld [vmem:[#allocation5 + $0x64] ss:$16 sps:$4 sm:$0xff]   ;;  %v1096_v9 = vld [vmem:[#allocation5 + $0x60] ss:$16 sps:$4 sm:$0xff]   ;;  %v1112_v11 = vld [vmem:[#allocation5 + $0x2c] ss:$16 sps:$4 sm:$0xff]   ;;  %518 = vmatpush1.bf16.msra.mxu1 %v1108_v8 }
  0x3b   :  { %v1097_v10 = vld [vmem:[#allocation5 + $0x84] ss:$16 sps:$4 sm:$0xff]   ;;  %v1114_v12 = vld [vmem:[#allocation5 + $0x28] ss:$16 sps:$4 sm:$0xff]   ;;  %519 = vmatprep.subr.bf16.mxu1 %v1112_v11  ;;  %v1099_v13 = vld [vmem:[#allocation5 + $0x80] ss:$16 sps:$4 sm:$0xff]  }
  0x3c   :  { %v1118_v14 = vld [vmem:[#allocation5 + $0x4c] ss:$16 sps:$4 sm:$0xff]   ;;  %v1100_v15 = vld [vmem:[#allocation5 + $0xa4] ss:$16 sps:$4 sm:$0xff]   ;;  %v1120_v16 = vld [vmem:[#allocation5 + $0x48] ss:$16 sps:$4 sm:$0xff]  }
  0x3d   :  { %467 = vmatpush1.bf16.msra.mxu0 %v1090_v3  ;;  %v1124_v17 = vld [vmem:[#allocation5 + $0x6c] ss:$16 sps:$4 sm:$0xff]   ;;  %v1102_v18 = vld [vmem:[#allocation5 + $0xa0] ss:$16 sps:$4 sm:$0xff]   ;;  %v1103_v19 = vld [vmem:[#allocation5 + $0xc4] ss:$16 sps:$4 sm:$0xff]  }
  0x3e   :  { %468 = vmatprep.subr.bf16.mxu0 %v1091_v4  ;;  %520 = vmatpush1.bf16.msra.mxu1 %v1114_v12  ;;  %v1126_v20 = vld [vmem:[#allocation5 + $0x68] ss:$16 sps:$4 sm:$0xff]   ;;  %v1130_v21 = vld [vmem:[#allocation5 + $0x8c] ss:$16 sps:$4 sm:$0xff]   ;;  %v1105_v22 = vld [vmem:[#allocation5 + $0xc0] ss:$16 sps:$4 sm:$0xff]  }
  0x3f   :  { %521 = vmatprep.subr.bf16.mxu1 %v1118_v14  ;;  %v1109_v23 = vld [vmem:[#allocation5 + $0xe4] ss:$16 sps:$4 sm:$0xff]   ;;  %v1132_v24 = vld [vmem:[#allocation5 + $0x88] ss:$16 sps:$4 sm:$0xff]   ;;  %v1136_v25 = vld [vmem:[#allocation5 + $0xac] ss:$16 sps:$4 sm:$0xff]  }
  0x40   :  { %v1111_v26 = vld [vmem:[#allocation5 + $0xe0] ss:$16 sps:$4 sm:$0xff]   ;;  %v1115_v27 = vld [vmem:[#allocation5 + $0x104] ss:$16 sps:$4 sm:$0xff]   ;;  %v1138_v28 = vld [vmem:[#allocation5 + $0xa8] ss:$16 sps:$4 sm:$0xff]  }
  0x41   :  { %469 = vmatpush1.bf16.msra.mxu0 %v1093_v5  ;;  %v1142_v29 = vld [vmem:[#allocation5 + $0xcc] ss:$16 sps:$4 sm:$0xff]   ;;  %v1117_v30 = vld [vmem:[#allocation5 + $0x100] ss:$16 sps:$4 sm:$0xff]   ;;  %v1121_v31 = vld [vmem:[#allocation5 + $0x124] ss:$16 sps:$4 sm:$0xff]  }
  0x42   :  { %470 = vmatprep.subr.bf16.mxu0 %v1094_v6  ;;  %522 = vmatpush1.bf16.msra.mxu1 %v1120_v16  ;;  %v1144_v32 = vld [vmem:[#allocation5 + $0xc8] ss:$16 sps:$4 sm:$0xff]   ;;  %v1148_v33 = vld [vmem:[#allocation5 + $0xec] ss:$16 sps:$4 sm:$0xff]   ;;  %v1123_v34 = vld [vmem:[#allocation5 + $0x120] ss:$16 sps:$4 sm:$0xff]  }
  0x43   :  { %523 = vmatprep.subr.bf16.mxu1 %v1124_v17  ;;  %v1165_v35 = vld [vmem:[#allocation2 + $0x4] ss:$8 sps:$4 sm:$0xff]   ;;  %v1150_v37 = vld [vmem:[#allocation5 + $0xe8] ss:$16 sps:$4 sm:$0xff]   ;;  %v1129_v39 = vld [vmem:[#allocation5 + $0x140] ss:$16 sps:$4 sm:$0xff]  }
  0x44   :  { %v1127_v36 = vld [vmem:[#allocation5 + $0x144] ss:$16 sps:$4 sm:$0xff]   ;;  %496 = vmatprep.mubr.bf16.mxu0 %v1165_v35  ;;  %v1154_v38 = vld [vmem:[#allocation5 + $0x10c] ss:$16 sps:$4 sm:$0xff]   ;;  %549 = vmatprep.mubr.bf16.mxu1 %v1165_v35  ;;  %v1156_v41 = vld [vmem:[#allocation5 + $0x108] ss:$16 sps:$4 sm:$0xff]  }
  0x45   :  { %471 = vmatpush1.bf16.msra.mxu0 %v1096_v9  ;;  %v1133_v40 = vld [vmem:[#allocation5 + $0x164] ss:$16 sps:$4 sm:$0xff]   ;;  %v1160_v42 = vld [vmem:[#allocation5 + $0x12c] ss:$16 sps:$4 sm:$0xff]   ;;  %v1135_v43 = vld [vmem:[#allocation5 + $0x160] ss:$16 sps:$4 sm:$0xff]  }
  0x46   :  { %472 = vmatprep.subr.bf16.mxu0 %v1097_v10  ;;  %524 = vmatpush1.bf16.msra.mxu1 %v1126_v20  ;;  %v1139_v44 = vld [vmem:[#allocation5 + $0x184] ss:$16 sps:$4 sm:$0xff]   ;;  %v1162_v45 = vld [vmem:[#allocation5 + $0x128] ss:$16 sps:$4 sm:$0xff]   ;;  %v1166_v46 = vld [vmem:[#allocation5 + $0x14c] ss:$16 sps:$4 sm:$0xff]  }
  0x47   :  { %525 = vmatprep.subr.bf16.mxu1 %v1130_v21  ;;  %v1141_v47 = vld [vmem:[#allocation5 + $0x180] ss:$16 sps:$4 sm:$0xff]   ;;  %v1145_v48 = vld [vmem:[#allocation5 + $0x1a4] ss:$16 sps:$4 sm:$0xff]   ;;  %v1168_v49 = vld [vmem:[#allocation5 + $0x148] ss:$16 sps:$4 sm:$0xff]  }
  0x48   :  { %v1169_v50 = vld [vmem:[#allocation5 + $0x16c] ss:$16 sps:$4 sm:$0xff]   ;;  %v1147_v51 = vld [vmem:[#allocation5 + $0x1a0] ss:$16 sps:$4 sm:$0xff]   ;;  %v1151_v52 = vld [vmem:[#allocation5 + $0x1c4] ss:$16 sps:$4 sm:$0xff]  }
  0x49   :  { %473 = vmatpush1.bf16.msra.mxu0 %v1099_v13  ;;  %v1153_v53 = vld [vmem:[#allocation5 + $0x1c0] ss:$16 sps:$4 sm:$0xff]   ;;  %v1171_v54 = vld [vmem:[#allocation5 + $0x168] ss:$16 sps:$4 sm:$0xff]   ;;  %v1157_v55 = vld [vmem:[#allocation5 + $0x1e4] ss:$16 sps:$4 sm:$0xff]  }
  0x4a   :  { %474 = vmatprep.subr.bf16.mxu0 %v1100_v15  ;;  %526 = vmatpush1.bf16.msra.mxu1 %v1132_v24  ;;  %v1175_v56 = vld [vmem:[#allocation5 + $0x18c] ss:$16 sps:$4 sm:$0xff]   ;;  %v1177_v57 = vld [vmem:[#allocation5 + $0x188] ss:$16 sps:$4 sm:$0xff]   ;;  %v1159_v59 = vld [vmem:[#allocation5 + $0x1e0] ss:$16 sps:$4 sm:$0xff]  }
  0x4b   :  { %527 = vmatprep.subr.bf16.mxu1 %v1136_v25  ;;  %v1178_v58 = vld [vmem:[#allocation5 + $0x1ac] ss:$16 sps:$4 sm:$0xff]   ;;  %v1180_v61 = vld [vmem:[#allocation5 + $0x1a8] ss:$16 sps:$4 sm:$0xff]   ;;  %s1368_s2 = smov [#allocation8]  }
  0x4c   :  { %v1189_v60 = vld [vmem:[#allocation7 + $0x4] ss:$8 sps:$4 sm:$0xff]   ;;  %v1163_v62 = vld [vmem:[#allocation2] ss:$8 sps:$4 sm:$0xff]   ;;  %v1172_v0 = vld [vmem:[#allocation2 + $0x14] ss:$8 sps:$4 sm:$0xff]  }
  0x4d   :  { %475 = vmatpush1.bf16.msra.mxu0 %v1102_v18  ;;  %v1181_v63 = vld [vmem:[#allocation5 + $0x1cc] ss:$16 sps:$4 sm:$0xff]   ;;  %v1187_v1 = vld [vmem:[#allocation7] ss:$8 sps:$4 sm:$0xff]   ;;  %v1190_v5 = vld [vmem:[#allocation7 + $0x10] ss:$8 sps:$4 sm:$0xff]  }
  0x4e   :  { %476 = vmatprep.subr.bf16.mxu0 %v1103_v19  ;;  %528 = vmatpush1.bf16.msra.mxu1 %v1138_v28  ;;  %v1192_v2 = vld [vmem:[#allocation7 + $0x14] ss:$8 sps:$4 sm:$0xff]   ;;  %v1183_v3 = vld [vmem:[#allocation5 + $0x1c8] ss:$16 sps:$4 sm:$0xff]   ;;  %v1195_v6 = vld [vmem:[#allocation7 + $0x24] ss:$8 sps:$4 sm:$0xff]  }
  0x4f   :  { %529 = vmatprep.subr.bf16.mxu1 %v1142_v29  ;;  %v1184_v4 = vld [vmem:[#allocation5 + $0x1ec] ss:$16 sps:$4 sm:$0xff]   ;;  %v1186_v7 = vld [vmem:[#allocation5 + $0x1e8] ss:$16 sps:$4 sm:$0xff]   ;;  %s916_s23 = sshll.u32 %s1368_s2, 4  ;;  %s917_s23 = int_to_ptr.vmem [resolvable:$true] %s916_s23 }
  0x50   :  { %v1174_v8 = vld [vmem:[#allocation2 + $0x10] ss:$8 sps:$4 sm:$0xff]   ;;  %v1193_v9 = vld [vmem:[#allocation7 + $0x20] ss:$8 sps:$4 sm:$0xff]   ;;  %v1198_v10 = vld [vmem:[#allocation7 + $0x34] ss:$8 sps:$4 sm:$0xff]   ;;  %p1338_p11 = scmp.lt.s32.totalorder %s917_s23, %s917_s23 }
  0x51   :  { %477 = vmatpush1.bf16.msra.mxu0 %v1105_v22  ;;  %v1196_v11 = vld [vmem:[#allocation7 + $0x30] ss:$8 sps:$4 sm:$0xff]   ;;  %v1201_v12 = vld [vmem:[#allocation7 + $0x44] ss:$8 sps:$4 sm:$0xff]   ;;  %v1199_v13 = vld [vmem:[#allocation7 + $0x40] ss:$8 sps:$4 sm:$0xff]  }
  0x52   :  { %478 = vmatprep.subr.bf16.mxu0 %v1109_v23  ;;  %530 = vmatpush1.bf16.msra.mxu1 %v1144_v32  ;;  %v1204_v14 = vld [vmem:[#allocation7 + $0x54] ss:$8 sps:$4 sm:$0xff]   ;;  %v1202_v15 = vld [vmem:[#allocation7 + $0x50] ss:$8 sps:$4 sm:$0xff]   ;;  %v1207_v16 = vld [vmem:[#allocation7 + $0x64] ss:$8 sps:$4 sm:$0xff]  }
  0x53   :  { %531 = vmatprep.subr.bf16.mxu1 %v1148_v33  ;;  %v1205_v17 = vld [vmem:[#allocation7 + $0x60] ss:$8 sps:$4 sm:$0xff]   ;;  %v1210_v18 = vld [vmem:[#allocation7 + $0x74] ss:$8 sps:$4 sm:$0xff]   ;;  %v1208_v19 = vld [vmem:[#allocation7 + $0x70] ss:$8 sps:$4 sm:$0xff]  }
  0x54   :  { %v1213_v20 = vld [vmem:[#allocation7 + $0x84] ss:$8 sps:$4 sm:$0xff]   ;;  %v1211_v21 = vld [vmem:[#allocation7 + $0x80] ss:$8 sps:$4 sm:$0xff]   ;;  %v1216_v22 = vld [vmem:[#allocation7 + $0x94] ss:$8 sps:$4 sm:$0xff]  }
  0x55   :  { %479 = vmatpush1.bf16.msra.mxu0 %v1111_v26  ;;  %v1214_v23 = vld [vmem:[#allocation7 + $0x90] ss:$8 sps:$4 sm:$0xff]   ;;  %v1219_v24 = vld [vmem:[#allocation7 + $0xa4] ss:$8 sps:$4 sm:$0xff]   ;;  %v1217_v25 = vld [vmem:[#allocation7 + $0xa0] ss:$8 sps:$4 sm:$0xff]  }
  0x56   :  { %480 = vmatprep.subr.bf16.mxu0 %v1115_v27  ;;  %532 = vmatpush1.bf16.msra.mxu1 %v1150_v37  ;;  %v1222_v26 = vld [vmem:[#allocation7 + $0xb4] ss:$8 sps:$4 sm:$0xff]   ;;  %v1220_v27 = vld [vmem:[#allocation7 + $0xb0] ss:$8 sps:$4 sm:$0xff]   ;;  %v1225_v28 = vld [vmem:[#allocation7 + $0xc4] ss:$8 sps:$4 sm:$0xff]  }
  0x57   :  { %533 = vmatprep.subr.bf16.mxu1 %v1154_v38  ;;  %v1223_v29 = vld [vmem:[#allocation7 + $0xc0] ss:$8 sps:$4 sm:$0xff]   ;;  %v1231_v32 = vld [vmem:[#allocation7 + $0xe4] ss:$8 sps:$4 sm:$0xff]   ;;  %v1232_v35 = vld [vmem:[#allocation7 + $0xf0] ss:$8 sps:$4 sm:$0xff]  }
  0x58   :  { %v1229_v33 = vld [vmem:[#allocation7 + $0xe0] ss:$8 sps:$4 sm:$0xff]   ;;  %s1333_s24 = scalar_lea.vmem %s917_s23, 512 }
  0x59   :  { %481 = vmatpush1.bf16.msra.mxu0 %v1117_v30  ;;  %v1228_v30 = vld [vmem:[#allocation7 + $0xd4] ss:$8 sps:$4 sm:$0xff]   ;;  %p1334_p10 = scmp.ne.s32.totalorder %s917_s23, %s1333_s24  ;;  %p1339_p12 = scmp.lt.s32.totalorder %s1333_s24, %s1333_s24 }
  0x5a   :  { %482 = vmatprep.subr.bf16.mxu0 %v1121_v31  ;;  %534 = vmatpush1.bf16.msra.mxu1 %v1156_v41  ;;  %v1226_v31 = vld [vmem:[#allocation7 + $0xd0] ss:$8 sps:$4 sm:$0xff]  }
  0x5b   :  { %535 = vmatprep.subr.bf16.mxu1 %v1160_v42  ;;  %p1340_p13 = por %p1339_p12, %p1338_p11 }
  0x5d   :  { %483 = vmatpush1.bf16.msra.mxu0 %v1123_v34  ;;  %v1234_v34 = vld [vmem:[#allocation7 + $0xf4] ss:$8 sps:$4 sm:$0xff]   ;;  %p1341_p0 = pnand %p1340_p13, %p1334_p10 }
  0x5e   :  { %484 = vmatprep.subr.bf16.mxu0 %v1127_v36  ;;  %536 = vmatpush1.bf16.msra.mxu1 %v1162_v45 }
  0x5f   :  { %537 = vmatprep.subr.bf16.mxu1 %v1166_v46 }
  0x61   :  { %485 = vmatpush1.bf16.msra.mxu0 %v1129_v39 }
  0x62   :  { %486 = vmatprep.subr.bf16.mxu0 %v1133_v40  ;;  %538 = vmatpush1.bf16.msra.mxu1 %v1168_v49 }
  0x63   :  { %539 = vmatprep.subr.bf16.mxu1 %v1169_v50 }
  0x65   :  { %487 = vmatpush1.bf16.msra.mxu0 %v1135_v43 }
  0x66   :  { %488 = vmatprep.subr.bf16.mxu0 %v1139_v44  ;;  %540 = vmatpush1.bf16.msra.mxu1 %v1171_v54 }
  0x67   :  { %541 = vmatprep.subr.bf16.mxu1 %v1175_v56 }
  0x69   :  { %489 = vmatpush1.bf16.msra.mxu0 %v1141_v47 }
  0x6a   :  { %490 = vmatprep.subr.bf16.mxu0 %v1145_v48  ;;  %542 = vmatpush1.bf16.msra.mxu1 %v1177_v57 }
  0x6b   :  { %543 = vmatprep.subr.bf16.mxu1 %v1178_v58 }
  0x6d   :  { %491 = vmatpush1.bf16.msra.mxu0 %v1147_v51 }
  0x6e   :  { %492 = vmatprep.subr.bf16.mxu0 %v1151_v52  ;;  %544 = vmatpush1.bf16.msra.mxu1 %v1180_v61 }
  0x6f   :  { %545 = vmatprep.subr.bf16.mxu1 %v1181_v63 }
  0x71   :  { %493 = vmatpush1.bf16.msra.mxu0 %v1153_v53 }
  0x72   :  { %494 = vmatprep.subr.bf16.mxu0 %v1157_v55  ;;  %546 = vmatpush1.bf16.msra.mxu1 %v1183_v3 }
  0x73   :  { %547 = vmatprep.subr.bf16.mxu1 %v1184_v4 }
  0x75   :  { %495 = vmatpush1.bf16.msra.mxu0 %v1159_v59 }
  0x76   :  { %830 = vmatprep.subr.bf16.mxu0 %v1189_v60  ;;  %548 = vmatpush1.bf16.msra.mxu1 %v1186_v7 }
  0x77   :  { %1045 = vmatprep.subr.bf16.mxu1 %v1189_v60 }
  0x78   :  { %497 = vmatmul.mubr.bf16.vlgmr.msra.gmra.mrb[0].mxu0 %v1163_v62 }
  0x79   :  { %506 = vmatprep.mubr.bf16.mxu0 %v1172_v0  ;;  %831 = vmatpush1.bf16.msra.mxu0 %v1187_v1 }
  0x7a   :  { %832 = vmatprep.subr.bf16.mxu0 %v1192_v2  ;;  %550 = vmatmul.mubr.bf16.vlgmr.msra.gmra.mrb[0].mxu1 %v1163_v62 }
  0x7b   :  { %559 = vmatprep.mubr.bf16.mxu1 %v1172_v0  ;;  %1061 = vmatpush1.bf16.msra.mxu1 %v1187_v1 }
  0x7c   :  { %1046 = vmatprep.subr.bf16.mxu1 %v1192_v2 }
  0x7d   :  { %833 = vmatpush1.bf16.msra.mxu0 %v1190_v5 }
  0x7e   :  { %834 = vmatprep.subr.bf16.mxu0 %v1195_v6 }
  0x7f   :  { %1062 = vmatpush1.bf16.msra.mxu1 %v1190_v5 }
  0x80   :  { %507 = vmatmul.mubr.bf16.gmra.mrb[4].mxu0 %v1174_v8  ;;  %1047 = vmatprep.subr.bf16.mxu1 %v1195_v6 }
  0x81   :  { %835 = vmatpush1.bf16.msra.mxu0 %v1193_v9 }
  0x82   :  { %836 = vmatprep.subr.bf16.mxu0 %v1198_v10  ;;  %560 = vmatmul.mubr.bf16.gmra.mrb[4].mxu1 %v1174_v8 }
  0x83   :  { %1063 = vmatpush1.bf16.msra.mxu1 %v1193_v9 }
  0x84   :  { %1048 = vmatprep.subr.bf16.mxu1 %v1198_v10 }
  0x85   :  { %837 = vmatpush1.bf16.msra.mxu0 %v1196_v11 }
  0x86   :  { %838 = vmatprep.subr.bf16.mxu0 %v1201_v12 }
  0x87   :  { %1064 = vmatpush1.bf16.msra.mxu1 %v1196_v11 }
  0x88   :  { %1049 = vmatprep.subr.bf16.mxu1 %v1201_v12 }
  0x89   :  { %839 = vmatpush1.bf16.msra.mxu0 %v1199_v13 }
  0x8a   :  { %840 = vmatprep.subr.bf16.mxu0 %v1204_v14 }
  0x8b   :  { %1065 = vmatpush1.bf16.msra.mxu1 %v1199_v13 }
  0x8c   :  { %1050 = vmatprep.subr.bf16.mxu1 %v1204_v14 }
  0x8d   :  { %841 = vmatpush1.bf16.msra.mxu0 %v1202_v15 }
  0x8e   :  { %842 = vmatprep.subr.bf16.mxu0 %v1207_v16 }
  0x8f   :  { %1066 = vmatpush1.bf16.msra.mxu1 %v1202_v15 }
  0x90   :  { %1051 = vmatprep.subr.bf16.mxu1 %v1207_v16 }
  0x91   :  { %843 = vmatpush1.bf16.msra.mxu0 %v1205_v17 }
  0x92   :  { %844 = vmatprep.subr.bf16.mxu0 %v1210_v18 }
  0x93   :  { %1067 = vmatpush1.bf16.msra.mxu1 %v1205_v17 }
  0x94   :  { %1052 = vmatprep.subr.bf16.mxu1 %v1210_v18 }
  0x95   :  { %845 = vmatpush1.bf16.msra.mxu0 %v1208_v19 }
  0x96   :  { %846 = vmatprep.subr.bf16.mxu0 %v1213_v20 }
  0x97   :  { %1068 = vmatpush1.bf16.msra.mxu1 %v1208_v19 }
  0x98   :  { %1053 = vmatprep.subr.bf16.mxu1 %v1213_v20 }
  0x99   :  { %847 = vmatpush1.bf16.msra.mxu0 %v1211_v21 }
  0x9a   :  { %848 = vmatprep.subr.bf16.mxu0 %v1216_v22 }
  0x9b   :  { %1069 = vmatpush1.bf16.msra.mxu1 %v1211_v21 }
  0x9c   :  { %1054 = vmatprep.subr.bf16.mxu1 %v1216_v22 }
  0x9d   :  { %849 = vmatpush1.bf16.msra.mxu0 %v1214_v23 }
  0x9e   :  { %850 = vmatprep.subr.bf16.mxu0 %v1219_v24 }
  0x9f   :  { %1070 = vmatpush1.bf16.msra.mxu1 %v1214_v23 }
  0xa0   :  { %1055 = vmatprep.subr.bf16.mxu1 %v1219_v24 }
  0xa1   :  { %851 = vmatpush1.bf16.msra.mxu0 %v1217_v25 }
  0xa2   :  { %852 = vmatprep.subr.bf16.mxu0 %v1222_v26 }
  0xa3   :  { %1071 = vmatpush1.bf16.msra.mxu1 %v1217_v25 }
  0xa4   :  { %1056 = vmatprep.subr.bf16.mxu1 %v1222_v26 }
  0xa5   :  { %853 = vmatpush1.bf16.msra.mxu0 %v1220_v27 }
  0xa6   :  { %854 = vmatprep.subr.bf16.mxu0 %v1225_v28 }
  0xa7   :  { %1072 = vmatpush1.bf16.msra.mxu1 %v1220_v27 }
  0xa8   :  { %1057 = vmatprep.subr.bf16.mxu1 %v1225_v28 }
  0xa9   :  { %855 = vmatpush1.bf16.msra.mxu0 %v1223_v29 }
  0xaa   :  { %856 = vmatprep.subr.bf16.mxu0 %v1228_v30 }
  0xab   :  { %1073 = vmatpush1.bf16.msra.mxu1 %v1223_v29 }
  0xac   :  { %1058 = vmatprep.subr.bf16.mxu1 %v1228_v30 }
  0xad   :  { %857 = vmatpush1.bf16.msra.mxu0 %v1226_v31 }
  0xae   :  { %858 = vmatprep.subr.bf16.mxu0 %v1231_v32 }
  0xaf   :  { %1074 = vmatpush1.bf16.msra.mxu1 %v1226_v31 }
  0xb0   :  { %1059 = vmatprep.subr.bf16.mxu1 %v1231_v32 }
  0xb1   :  { %859 = vmatpush1.bf16.msra.mxu0 %v1229_v33 }
  0xb2   :  { %860 = vmatprep.subr.bf16.mxu0 %v1234_v34 }
  0xb3   :  { %1075 = vmatpush1.bf16.msra.mxu1 %v1229_v33 }
  0xb4   :  { %1060 = vmatprep.subr.bf16.mxu1 %v1234_v34 }
  0xb5   :  { %861 = vmatpush1.bf16.msra.mxu0 %v1232_v35 }
  0xb7   :  { %1076 = vmatpush1.bf16.msra.mxu1 %v1232_v35 }
 0x14b   :  { %v498_v36 = vpop.f32.mrb[0].mxu0 }
 0x14c   :  { %v997_v37 = vmul.f32 -1.442695, %v498_v36  ;;  %v500_v38 = vpop.f32.mrb[1].mxu0 }
 0x14d   :  { %v998_v39 = vmul.f32 -1.442695, %v500_v38  ;;  %v502_v40 = vpop.f32.mrb[2].mxu0  ;;  %v551_v49 = vpop.f32.mrb[0].mxu1 }
 0x14e   :  { %1235 = vpow2.f32 %v997_v37  ;;  %v999_v41 = vmul.f32 -1.442695, %v502_v40  ;;  %v504_v42 = vpop.f32.mrb[3].mxu0  ;;  %v553_v52 = vpop.f32.mrb[1].mxu1 }
 0x14f   :  { %1237 = vpow2.f32 %v998_v39  ;;  %v1000_v43 = vmul.f32 -1.442695, %v504_v42  ;;  %v555_v54 = vpop.f32.mrb[2].mxu1 }
 0x150   :  { %1239 = vpow2.f32 %v999_v41  ;;  %v557_v56 = vpop.f32.mrb[3].mxu1 }
 0x151   :  { %1241 = vpow2.f32 %v1000_v43 }
 0x153   :  { %v508_v44 = vpop.f32.mrb[4].mxu0 }
 0x154   :  { %v1001_v45 = vmul.f32 -1.442695, %v508_v44  ;;  %v510_v46 = vpop.f32.mrb[5].mxu0 }
 0x155   :  { %v1002_v47 = vmul.f32 -1.442695, %v510_v46  ;;  %v512_v48 = vpop.f32.mrb[6].mxu0  ;;  %v561_v0 = vpop.f32.mrb[4].mxu1 }
 0x156   :  { %1243 = vpow2.f32 %v1001_v45  ;;  %v1003_v50 = vmul.f32 -1.442695, %v512_v48  ;;  %v514_v51 = vpop.f32.mrb[7].mxu0  ;;  %v563_v1 = vpop.f32.mrb[5].mxu1 }
 0x157   :  { %1245 = vpow2.f32 %v1002_v47  ;;  %v1004_v53 = vmul.f32 -1.442695, %v514_v51  ;;  %v565_v2 = vpop.f32.mrb[6].mxu1 }
 0x158   :  { %v1236_v55 = vpop.eup %1235  ;;  %1247 = vpow2.f32 %v1003_v50  ;;  %v567_v4 = vpop.f32.mrb[7].mxu1 }
 0x159   :  { %v1238_v57 = vpop.eup %1237  ;;  %v594_v58 = vadd.f32 1.0, %v1236_v55  ;;  %1249 = vpow2.f32 %v1004_v53 }
 0x15a   :  { %v1240_v59 = vpop.eup %1239  ;;  %v595_v60 = vadd.f32 1.0, %v1238_v57 }
 0x15b   :  { %v1242_v61 = vpop.eup %1241  ;;  %1251 = vrcp.f32 %v594_v58  ;;  %v596_v62 = vadd.f32 1.0, %v1240_v59 }
 0x15c   :  { %1253 = vrcp.f32 %v595_v60  ;;  %v597_v63 = vadd.f32 1.0, %v1242_v61 }
 0x15d   :  { %1255 = vrcp.f32 %v596_v62 }
 0x15e   :  { %1257 = vrcp.f32 %v597_v63 }
 0x160   :  { %v1244_v3 = vpop.eup %1243 }
 0x161   :  { %v1246_v5 = vpop.eup %1245  ;;  %v598_v6 = vadd.f32 1.0, %v1244_v3 }
 0x162   :  { %v1248_v7 = vpop.eup %1247  ;;  %v599_v8 = vadd.f32 1.0, %v1246_v5 }
 0x163   :  { %v1250_v9 = vpop.eup %1249  ;;  %1259 = vrcp.f32 %v598_v6  ;;  %v600_v10 = vadd.f32 1.0, %v1248_v7 }
 0x164   :  { %1261 = vrcp.f32 %v599_v8  ;;  %v601_v11 = vadd.f32 1.0, %v1250_v9 }
 0x165   :  { %v1252_v12 = vpop.eup %1251  ;;  %1263 = vrcp.f32 %v600_v10 }
 0x166   :  { %v1254_v13 = vpop.eup %1253  ;;  %v618_v14 = vmul.f32 %v1252_v12, %v498_v36  ;;  %1265 = vrcp.f32 %v601_v11 }
 0x167   :  { %v1256_v15 = vpop.eup %1255  ;;  %v619_v16 = vmul.f32 %v1254_v13, %v500_v38 }
 0x168   :  { %v1258_v17 = vpop.eup %1257  ;;  %v620_v18 = vmul.f32 %v1256_v15, %v502_v40  ;;  %v626_v19 = vmul.f32 %v618_v14, %v551_v49 }
 0x169   :  { %v621_v20 = vmul.f32 %v1258_v17, %v504_v42  ;;  %v627_v21 = vmul.f32 %v619_v16, %v553_v52 }
 0x16a   :  { %v628_v22 = vmul.f32 %v620_v18, %v555_v54 }
 0x16b   :  { %v629_v23 = vmul.f32 %v621_v20, %v557_v56 }
 0x16c   :  { %v634_v24 = vpack.c.bf16 %v628_v22, %v626_v19 }
 0x16d   :  { %v1260_v25 = vpop.eup %1259  ;;  %v635_v26 = vpack.c.bf16 %v629_v23, %v627_v21 }
 0x16e   :  { %v1262_v27 = vpop.eup %1261  ;;  %v622_v28 = vmul.f32 %v1260_v25, %v508_v44 }
 0x16f   :  { %v1264_v29 = vpop.eup %1263  ;;  %v623_v30 = vmul.f32 %v1262_v27, %v510_v46  ;;  %862 = vmatprep.mubr.bf16.mxu0 %v635_v26 }
 0x170   :  { %v1266_v31 = vpop.eup %1265  ;;  %v624_v32 = vmul.f32 %v1264_v29, %v512_v48  ;;  %v630_v33 = vmul.f32 %v622_v28, %v561_v0  ;;  %863 = vmatmul.mubr.bf16.vlgmr.msra.gmra.mrb[8].mxu0 %v634_v24 }
 0x171   :  { %v625_v34 = vmul.f32 %v1266_v31, %v514_v51  ;;  %v631_v35 = vmul.f32 %v623_v30, %v563_v1 }
 0x172   :  { %v632_v36 = vmul.f32 %v624_v32, %v565_v2 }
 0x173   :  { %v633_v37 = vmul.f32 %v625_v34, %v567_v4 }
 0x174   :  { %v636_v38 = vpack.c.bf16 %v632_v36, %v630_v33 }
 0x175   :  { %v637_v39 = vpack.c.bf16 %v633_v37, %v631_v35 }
 0x177   :  { %872 = vmatprep.mubr.bf16.mxu1 %v637_v39 }
 0x178   :  { %873 = vmatmul.mubr.bf16.vlgmr.msra.gmra.mrb[8].mxu1 %v636_v38 }
 0x243   :  { %v864_v40 = vpop.f32.mrb[8].mxu0 }
 0x244   :  { %v866_v41 = vpop.f32.mrb[9].mxu0 }
 0x245   :  { %v1041_v42 = vpack.c.bf16 %v866_v41, %v864_v40  ;;  %v868_v43 = vpop.f32.mrb[10].mxu0 }
 0x246   :  { %v870_v44 = vpop.f32.mrb[11].mxu0 }
 0x247   :  { %907 = vst [vmem:[#allocation8] sm:$0xff] %v1041_v42  ;;  %v1042_v45 = vpack.c.bf16 %v870_v44, %v868_v43 }
 0x249   :  { %908 = vst [vmem:[#allocation8 + $0x8] sm:$0xff] %v1042_v45 }
 0x24b   :  { %v874_v46 = vpop.f32.mrb[8].mxu1 }
 0x24c   :  { %v876_v47 = vpop.f32.mrb[9].mxu1 }
 0x24d   :  { %v1043_v48 = vpack.c.bf16 %v876_v47, %v874_v46  ;;  %v878_v49 = vpop.f32.mrb[10].mxu1 }
 0x24e   :  { %v880_v50 = vpop.f32.mrb[11].mxu1 }
 0x24f   :  { %909 = vst [vmem:[#allocation8 + $0x10] sm:$0xff] %v1043_v48  ;;  %v1044_v51 = vpack.c.bf16 %v880_v50, %v878_v49 }
 0x251   :  { %910 = vst [vmem:[#allocation8 + $0x18] sm:$0xff] %v1044_v51 }
 0x252   :  { %1344 = shalt.err (!%p1341_p0)
}
 0x253   :  { %s1345_s27 = scalar_lea.hbm %s1449_s3, 512 }
 0x254   :  { %p1346_p1 = scmp.ne.s32.totalorder %s1449_s3, %s1345_s27  ;;  %p1349_p2 = scmp.lt.u32.totalorder %s1345_s27, %s1449_s3 }
 0x256   :  { %p1351_p3 = pnand %p1349_p2, %p1346_p1 }
 0x258   :  { %1354 = shalt.err (!%p1351_p3)
}
 0x259   :  { %922 = dma.vmem_to_hbm [thread:$0]  %s917_s23, 512, %s1449_s3, [#allocation4], %s1365_s1, %s1365_s1, %s1366_s9  }
 0x25a   :  { %1359 = dma.done.wait [#allocation4], 512  }
 0x25b   :  { %1360 = vsyncadd [#allocation4], 4294966784 }
 0x25c   :  { %926 = vsyncpa [#allocation3], 1 }
 0x25d   :  { %927 = vsyncpa [#allocation6], 1 }
 0x25e   :  { %928 = vsyncpa [#allocation4], 1 }

</bundles_post_ra>
